<compile_context>
chip_gen: v7x
topology: tpu7x:2x2x1
jax: 0.10.0
libtpu: 0.0.40
codegen_flags: <defaults>
</compile_context>

<pallas_src>
import functools

import jax
import jax.numpy as jnp
from jax.experimental import pallas as pl
from jax.experimental.pallas import tpu as pltpu

_MIB = 1024 * 1024


def _round_up(a: int, m: int) -> int:
    return (a + m - 1) // m * m


def _cdiv(a: int, b: int) -> int:
    return -(-a // b)


def _vmem_capacity_bytes() -> int:
    """Per-core VMEM capacity; conservative (v7x = 64 MiB) fallback."""
    try:
        info = pltpu.get_tpu_info()
        cap = int(getattr(info, "vmem_capacity_bytes", 0) or 0)
        if cap > 0:
            return cap
    except Exception:
        pass
    return 64 * _MIB


# ----------------------------------------------------------------------------
# Fused single-pass kernel: whole (b,c) row per block.
# ----------------------------------------------------------------------------
def _adain_fused_kernel(x_ref, wb_ref, o_ref, *, eps: float, inv_hw: float,
                        tile_bc: int):
    # x_ref: (tile_bc, HW) block; wb_ref: resident (bc_pad, 2) f32 (w, b).
    xf = x_ref[...].astype(jnp.float32)

    # Row-wise spatial sums (cross-lane reductions run on the XLU).
    row_sum = jnp.sum(xf, axis=-1, keepdims=True)
    row_sumsq = jnp.sum(xf * xf, axis=-1, keepdims=True)
    mean = row_sum * inv_hw
    # Clamp: E[x^2] - E[x]^2 can go slightly negative from cancellation.
    var = jnp.maximum(row_sumsq * inv_hw - mean * mean, 0.0)
    inv_std = jax.lax.rsqrt(var + eps)

    # Slice this grid step's rows out of the resident affine-param block.
    r0 = pl.multiple_of(pl.program_id(0) * tile_bc, tile_bc)
    wb = wb_ref[pl.ds(r0, tile_bc), :]              # (tile_bc, 2), f32
    scale = inv_std * wb[:, 0:1]
    shift = wb[:, 1:2] - mean * scale

    # Hot path in f32 (VPU slack; matches PyTorch's f32-internal batch_norm),
    # single cast at the store.
    o_ref[...] = (xf * scale + shift).astype(o_ref.dtype)


# ----------------------------------------------------------------------------
# HW-split path, pass 1: per-row [sum, sumsq] accumulated over lane chunks.
# ----------------------------------------------------------------------------
def _adain_stats_kernel(x_ref, stats_ref, *, hw: int, chunk: int):
    j = pl.program_id(1)

    @pl.when(j == 0)
    def _init():
        stats_ref[...] = jnp.zeros_like(stats_ref)

    xf = x_ref[...].astype(jnp.float32)
    # Mask lanes past the true HW extent (ragged last chunk reads garbage).
    col = jax.lax.broadcasted_iota(jnp.int32, xf.shape, 1) + j * chunk
    xf = jnp.where(col < hw, xf, 0.0)

    s = jnp.sum(xf, axis=-1, keepdims=True)
    ss = jnp.sum(xf * xf, axis=-1, keepdims=True)
    stats_ref[...] += jnp.concatenate([s, ss], axis=-1)


# ----------------------------------------------------------------------------
# HW-split path, pass 2: normalize + affine, chunk by chunk.
# ----------------------------------------------------------------------------
def _adain_norm_kernel(x_ref, stats_ref, wb_ref, o_ref, *, eps: float,
                       inv_hw: float):
    xf = x_ref[...].astype(jnp.float32)

    st = stats_ref[...]                              # (tile_bc, 2) f32
    mean = st[:, 0:1] * inv_hw
    var = jnp.maximum(st[:, 1:2] * inv_hw - mean * mean, 0.0)
    inv_std = jax.lax.rsqrt(var + eps)

    wb = wb_ref[...].astype(jnp.float32)             # (tile_bc, 2)
    scale = inv_std * wb[:, 0:1]
    shift = wb[:, 1:2] - mean * scale

    o_ref[...] = (xf * scale + shift).astype(o_ref.dtype)


# ----------------------------------------------------------------------------
# Wrapper
# ----------------------------------------------------------------------------
def adaptive_instance_norm_2d(x, weight, bias, *, eps: float = 1e-5,
                              force_split: bool = False,
                              chunk_override=None):
    """AdaIN forward.

    Args:
      x:      (B, C, H, W) array (NCHW, like the PyTorch module).
      weight: (B*C,) per-instance scale (assigned externally, MUNIT-style).
      bias:   (B*C,) per-instance shift.
      eps:    numerical epsilon.
      force_split / chunk_override: testing knobs for the HW-split path.

    Returns:
      (B, C, H, W) array, same dtype as x.
    """
    B, C, H, W = x.shape
    BC, HW = B * C, H * W
    assert weight.shape == (BC,) and bias.shape == (BC,), (
        "Please assign weight and bias (shape (B*C,)) before calling AdaIN!")

    itemsize = jnp.dtype(x.dtype).itemsize
    # dtype-aware sublane quantum: (8,128) f32 tiles, (16,128) bf16, (32,128) int8.
    quantum = {4: 8, 2: 16, 1: 32}.get(itemsize, 8)

    vmem_cap = _vmem_capacity_bytes()
    # ~16 MiB blocks on v5e/v6e (128 MiB VMEM), ~8 MiB on v7x (64 MiB VMEM):
    # big enough to bury the ~0.35us/step overhead under HBM-roofline step time.
    target_tile_bytes = max(_MIB, vmem_cap // 8)

    inv_hw = 1.0 / HW
    # Actual VMEM footprint of one (b,c) row (lane dim padded to 128 by layout).
    row_bytes = _round_up(HW, 128) * itemsize

    x2 = x.reshape(BC, HW)                           # free bitcast-style reshape
    wb = jnp.stack([weight.astype(jnp.float32), bias.astype(jnp.float32)],
                   axis=-1)                          # (BC, 2): col0=w, col1=b

    # Fused path iff the double-buffered in+out working set of a minimum
    # (quantum-row) tile stays within ~half of VMEM.
    use_fused = (not force_split) and (quantum * row_bytes <= vmem_cap // 8)

    if use_fused:
        if BC <= quantum:
            tile_bc = BC                             # full-extent row block
        else:
            rows_fit = max(quantum,
                           (target_tile_bytes // row_bytes) // quantum * quantum)
            tile_bc = min(rows_fit, _round_up(BC, quantum))
            # Give v7x's 2 TensorCores >=2 pipelined steps each when possible.
            desired_steps = min(4, _cdiv(BC, quantum))
            if _cdiv(BC, tile_bc) < desired_steps:
                tile_bc = max(quantum, _round_up(_cdiv(BC, desired_steps), quantum))
        n_steps = _cdiv(BC, tile_bc)
        bc_pad = n_steps * tile_bc

        # Pad only the tiny affine-param array (BC*2 floats) so the resident
        # block + in-kernel pl.ds slicing never reads out of bounds.
        if bc_pad != BC:
            wb = jnp.pad(wb, ((0, bc_pad - BC), (0, 0)))

        tile_bytes = tile_bc * row_bytes
        # Double-buffered in + out blocks + resident wb (128-lane layout) + slack,
        # capped safely below physical VMEM (v7x: <= ~54 MiB).
        vmem_limit = int(min(int(0.85 * vmem_cap),
                             max(32 * _MIB, 4 * tile_bytes + bc_pad * 512 + 2 * _MIB)))

        out2 = pl.pallas_call(
            functools.partial(_adain_fused_kernel, eps=eps, inv_hw=inv_hw,
                              tile_bc=tile_bc),
            out_shape=jax.ShapeDtypeStruct((BC, HW), x.dtype),
            grid_spec=pltpu.PrefetchScalarGridSpec(
                num_scalar_prefetch=0,
                grid=(n_steps,),
                in_specs=[
                    pl.BlockSpec((tile_bc, HW), lambda i: (i, 0)),
                    pl.BlockSpec((bc_pad, 2), lambda i: (0, 0)),   # resident
                ],
                out_specs=pl.BlockSpec((tile_bc, HW), lambda i: (i, 0)),
            ),
            compiler_params=pltpu.CompilerParams(
                dimension_semantics=("parallel",),
                vmem_limit_bytes=vmem_limit),
        )(x2, wb)
        return out2.reshape(B, C, H, W)

    # ------------------------------------------------------------------
    # HW-split two-pass path (large spatial sizes / forced for testing).
    # ------------------------------------------------------------------
    tile_bc = BC if BC <= quantum else quantum
    n_bc = _cdiv(BC, tile_bc)

    max_chunk = _round_up(HW, 128)
    chunk = (target_tile_bytes // max(1, tile_bc * itemsize)) // 128 * 128
    chunk = int(max(128, min(max_chunk, chunk)))
    if chunk_override is not None:
        chunk = int(max(128, min(max_chunk, _round_up(int(chunk_override), 128))))
    n_hw = _cdiv(HW, chunk)

    tile_bytes = tile_bc * chunk * itemsize
    vmem_limit = int(min(int(0.85 * vmem_cap),
                         max(32 * _MIB, 4 * tile_bytes + 2 * _MIB)))

    # Pass 1: per-row [sum, sumsq] with the HW axis chunked ('arbitrary' axis,
    # accumulator output block resident across it).
    stats = pl.pallas_call(
        functools.partial(_adain_stats_kernel, hw=HW, chunk=chunk),
        out_shape=jax.ShapeDtypeStruct((BC, 2), jnp.float32),
        grid_spec=pltpu.PrefetchScalarGridSpec(
            num_scalar_prefetch=0,
            grid=(n_bc, n_hw),
            in_specs=[pl.BlockSpec((tile_bc, chunk), lambda i, j: (i, j))],
            out_specs=pl.BlockSpec((tile_bc, 2), lambda i, j: (i, 0)),
        ),
        compiler_params=pltpu.CompilerParams(
            dimension_semantics=("parallel", "arbitrary"),
            vmem_limit_bytes=vmem_limit),
    )(x2)

    # Pass 2: normalize + affine, chunk by chunk (fully parallel grid).
    out2 = pl.pallas_call(
        functools.partial(_adain_norm_kernel, eps=eps, inv_hw=inv_hw),
        out_shape=jax.ShapeDtypeStruct((BC, HW), x.dtype),
        grid_spec=pltpu.PrefetchScalarGridSpec(
            num_scalar_prefetch=0,
            grid=(n_bc, n_hw),
            in_specs=[
                pl.BlockSpec((tile_bc, chunk), lambda i, j: (i, j)),
                pl.BlockSpec((tile_bc, 2), lambda i, j: (i, 0)),
                pl.BlockSpec((tile_bc, 2), lambda i, j: (i, 0)),
            ],
            out_specs=pl.BlockSpec((tile_bc, chunk), lambda i, j: (i, j)),
        ),
        compiler_params=pltpu.CompilerParams(
            dimension_semantics=("parallel", "parallel"),
            vmem_limit_bytes=vmem_limit),
    )(x2, stats, wb)
    return out2.reshape(B, C, H, W)


# ----------------------------------------------------------------------------
# Pure-JAX reference (mirrors F.batch_norm(training=True) on the (1,BC,H,W) view)
# ----------------------------------------------------------------------------
def _reference_adain(x, weight, bias, eps=1e-5):
    B, C, H, W = x.shape
    xr = x.reshape(B * C, H * W).astype(jnp.float32)
    mean = jnp.mean(xr, axis=-1, keepdims=True)
    var = jnp.mean(xr * xr, axis=-1, keepdims=True) - mean * mean
    out = (xr - mean) * jax.lax.rsqrt(var + eps)
    out = out * weight.astype(jnp.float32)[:, None] + bias.astype(jnp.float32)[:, None]
    return out.reshape(B, C, H, W).astype(x.dtype)


if __name__ == "__main__":
    key = jax.random.PRNGKey(0)
    keys = jax.random.split(key, 12)

    # Case 1: clean shape implied by the module (B=2, C=4, 16x16) — fused path.
    B, C, H, W = 2, 4, 16, 16
    x = jax.random.normal(keys[0], (B, C, H, W), dtype=jnp.float32)
    w = jax.random.normal(keys[1], (B * C,), dtype=jnp.float32) + 1.0
    b = 0.1 * jax.random.normal(keys[2], (B * C,), dtype=jnp.float32)
    out = jax.block_until_ready(adaptive_instance_norm_2d(x, w, b, eps=1e-5))
    ref = _reference_adain(x, w, b, eps=1e-5)
    assert out.shape == (B, C, H, W)
    assert jnp.allclose(out, ref, atol=1e-4, rtol=1e-4)

    # Case 2: ragged shape — HW=100 (not a lane multiple), BC=12 (ragged tile).
    B2, C2, H2, W2 = 2, 6, 10, 10
    x2 = jax.random.normal(keys[3], (B2, C2, H2, W2), dtype=jnp.float32)
    w2 = jax.random.normal(keys[4], (B2 * C2,), dtype=jnp.float32) + 1.0
    b2 = 0.1 * jax.random.normal(keys[5], (B2 * C2,), dtype=jnp.float32)
    out2 = jax.block_until_ready(adaptive_instance_norm_2d(x2, w2, b2, eps=1e-5))
    ref2 = _reference_adain(x2, w2, b2, eps=1e-5)
    assert out2.shape == (B2, C2, H2, W2)
    assert jnp.allclose(out2, ref2, atol=1e-4, rtol=1e-4)

    # Case 3: bf16 inputs (f32-internal math, cast once at the store).
    x3 = jax.random.normal(keys[6], (B, C, H, W), dtype=jnp.bfloat16)
    w3 = (jax.random.normal(keys[7], (B * C,), dtype=jnp.float32) + 1.0)
    b3 = 0.1 * jax.random.normal(keys[8], (B * C,), dtype=jnp.float32)
    out3 = jax.block_until_ready(adaptive_instance_norm_2d(x3, w3, b3, eps=1e-5))
    ref3 = _reference_adain(x3, w3, b3, eps=1e-5)
    assert out3.shape == (B, C, H, W)
    assert jnp.allclose(out3.astype(jnp.float32), ref3.astype(jnp.float32),
                        atol=5e-2, rtol=5e-2)

    # Case 4: force the HW-split two-pass path (ragged BC=14, ragged last chunk).
    B4, C4, H4, W4 = 2, 7, 40, 40
    x4 = jax.random.normal(keys[9], (B4, C4, H4, W4), dtype=jnp.float32)
    w4 = jax.random.normal(keys[10], (B4 * C4,), dtype=jnp.float32) + 1.0
    b4 = 0.1 * jax.random.normal(keys[11], (B4 * C4,), dtype=jnp.float32)
    out4 = jax.block_until_ready(
        adaptive_instance_norm_2d(x4, w4, b4, eps=1e-5,
                                  force_split=True, chunk_override=256))
    ref4 = _reference_adain(x4, w4, b4, eps=1e-5)
    assert out4.shape == (B4, C4, H4, W4)
    assert jnp.allclose(out4, ref4, atol=1e-4, rtol=1e-4)

    print("KERNEL_OK")
</pallas_src>

<mosaic_0001>
module attributes {stable_mosaic.version = 11 : i64} {
  func.func @_adain_fused_kernel(%arg0: i32, %arg1: memref<8x256xf32, #tpu.memory_space<vmem>>, %arg2: memref<8x2xf32, #tpu.memory_space<vmem>>, %arg3: memref<8x256xf32, #tpu.memory_space<vmem>>) attributes {dimension_semantics = [#tpu.dimension_semantics<parallel>], iteration_bounds = array<i64: 1>, scalar_prefetch = 0 : i64, scratch_operands = 0 : i64, tpu.core_type = #tpu.core_type<tc>, window_params = [{transform_indices = @transform_0, window_bounds = array<i64: 8, 256>}, {pipeline_mode = #tpu.pipeline_mode<synchronous>, transform_indices = @transform_1, window_bounds = array<i64: 8, 2>}, {transform_indices = @transform_2, window_bounds = array<i64: 8, 256>}]} {
    %c0 = arith.constant 0 : index
    %c0_0 = arith.constant 0 : index
    %0 = vector.load %arg1[%c0, %c0_0] : memref<8x256xf32, #tpu.memory_space<vmem>>, vector<8x256xf32>
    %cst = arith.constant dense<0.000000e+00> : vector<8xf32>
    %1 = vector.multi_reduction <add>, %0, %cst [1] : vector<8x256xf32> to vector<8xf32>
    %2 = vector.shape_cast %1 : vector<8xf32> to vector<8x1xf32>
    %3 = arith.mulf %0, %0 : vector<8x256xf32>
    %cst_1 = arith.constant dense<0.000000e+00> : vector<8xf32>
    %4 = vector.multi_reduction <add>, %3, %cst_1 [1] : vector<8x256xf32> to vector<8xf32>
    %5 = vector.shape_cast %4 : vector<8xf32> to vector<8x1xf32>
    %cst_2 = arith.constant 3.906250e-03 : f32
    %6 = vector.broadcast %cst_2 : f32 to vector<8x1xf32>
    %7 = arith.mulf %2, %6 : vector<8x1xf32>
    %cst_3 = arith.constant 3.906250e-03 : f32
    %8 = vector.broadcast %cst_3 : f32 to vector<8x1xf32>
    %9 = arith.mulf %5, %8 : vector<8x1xf32>
    %10 = arith.mulf %7, %7 : vector<8x1xf32>
    %11 = arith.subf %9, %10 : vector<8x1xf32>
    %cst_4 = arith.constant 0.000000e+00 : f32
    %12 = vector.broadcast %cst_4 : f32 to vector<8x1xf32>
    %13 = arith.maximumf %11, %12 : vector<8x1xf32>
    %cst_5 = arith.constant 9.99999974E-6 : f32
    %14 = vector.broadcast %cst_5 : f32 to vector<8x1xf32>
    %15 = arith.addf %13, %14 : vector<8x1xf32>
    %16 = math.rsqrt %15 : vector<8x1xf32>
    %c8_i32 = arith.constant 8 : i32
    %17 = arith.muli %arg0, %c8_i32 : i32
    %18 = tpu.assume_multiple %17, 8 : i32
    %19 = arith.index_cast %18 : i32 to index
    %c0_6 = arith.constant 0 : index
    %20 = vector.load %arg2[%19, %c0_6] : memref<8x2xf32, #tpu.memory_space<vmem>>, vector<8x2xf32>
    %21 = vector.extract_strided_slice %20 {offsets = [0, 0], sizes = [8, 1], strides = [1, 1]} : vector<8x2xf32> to vector<8x1xf32>
    %22 = arith.mulf %16, %21 : vector<8x1xf32>
    %23 = vector.extract_strided_slice %20 {offsets = [0, 1], sizes = [8, 1], strides = [1, 1]} : vector<8x2xf32> to vector<8x1xf32>
    %24 = arith.mulf %7, %22 : vector<8x1xf32>
    %25 = arith.subf %23, %24 : vector<8x1xf32>
    %26 = vector.broadcast %22 : vector<8x1xf32> to vector<8x256xf32>
    %27 = arith.mulf %0, %26 : vector<8x256xf32>
    %28 = vector.broadcast %25 : vector<8x1xf32> to vector<8x256xf32>
    %29 = arith.addf %27, %28 : vector<8x256xf32>
    %c0_7 = arith.constant 0 : index
    %c0_8 = arith.constant 0 : index
    %30 = vector.load %arg3[%c0_7, %c0_8] : memref<8x256xf32, #tpu.memory_space<vmem>>, vector<8x256xf32>
    tpu.vector_store %arg3[%c0_7, %c0_8], %29 {strides = array<i32>} : memref<8x256xf32, #tpu.memory_space<vmem>>, vector<8x256xf32>,
    return
  }
  func.func @transform_0(%arg0: i32) -> (i32, i32) {
    %c0_i32 = arith.constant 0 : i32
    %c0_i32_0 = arith.constant 0 : i32
    return %arg0, %c0_i32 : i32, i32
  }
  func.func @transform_1(%arg0: i32) -> (i32, i32) {
    %c0_i32 = arith.constant 0 : i32
    %c0_i32_0 = arith.constant 0 : i32
    %c0_i32_1 = arith.constant 0 : i32
    return %c0_i32, %c0_i32_0 : i32, i32
  }
  func.func @transform_2(%arg0: i32) -> (i32, i32) {
    %c0_i32 = arith.constant 0 : i32
    %c0_i32_0 = arith.constant 0 : i32
    return %arg0, %c0_i32 : i32, i32
  }
}

</mosaic_0001>

<bundles_post_ra>
// kernel: tpu_custom_call.1
= control target key start
LH: loop header
LB: loop body
LE: loop exit
PB: predicated region body
PF: predicated region fallthrough
CT: control target
= control target key end

     0   :  { %7 = vsyncpa [#allocation3], 0  ;;  %s186_s0 = inlined_call_operand.hbm [shape: f32[8,256], index: 0, kind: input, shape index: {}]   ;;  %s187_s1 = inlined_call_operand.vmem [shape: f32[8,2], index: 1, kind: input, shape index: {}]   ;;  %s188_s2 = inlined_call_operand.hbm [shape: f32[8,256], index: 2, kind: output, shape index: {}]  }
   0x1   :  { %8 = vsyncpa [#allocation4], 0  ;;  %s139_s9 = smov [#allocation2]   ;;  %s91_s13 = scalar_lea.hbm %s186_s0, 256 }
   0x2   :  { %s15_s10 = sshll.u32 %s139_s9, 4  ;;  %p92_p0 = scmp.ne.s32.totalorder %s186_s0, %s91_s13  ;;  %s16_s10 = int_to_ptr.vmem [resolvable:$true] %s15_s10 }
   0x3   :  { %p95_p1 = scmp.lt.u32.totalorder %s91_s13, %s186_s0 }
   0x5   :  { %p97_p2 = pnand %p95_p1, %p92_p0 }
   0x7   :  { %100 = shalt.err (!%p97_p2)
}
   0x8   :  { %s101_s18 = scalar_lea.vmem %s16_s10, 256  ;;  %p106_p4 = scmp.lt.s32.totalorder %s16_s10, %s16_s10 }
   0x9   :  { %p102_p3 = scmp.ne.s32.totalorder %s16_s10, %s101_s18  ;;  %p107_p5 = scmp.lt.s32.totalorder %s101_s18, %s101_s18 }
   0xb   :  { %p108_p6 = por %p107_p5, %p106_p4 }
   0xd   :  { %p109_p7 = pnand %p108_p6, %p102_p3 }
   0xf   :  { %112 = shalt.err (!%p109_p7)
}
  0x10   :  { %18 = dma.hbm_to_vmem [thread:$0]  %s186_s0, 256, %s16_s10, [#allocation3]  }
  0x11   :  { %135 = dma.done.wait [#allocation3], 256  }
  0x12   :  { %136 = vsyncadd [#allocation3], 4294967040  ;;  %v24_v0 = vld [vmem:[#allocation2] sm:$0xff]  ;;  %v25_v1 = vld [vmem:[#allocation2 + $0x8] sm:$0xff]  ;;  %v140_v6 = vmov 0   ;;  %v141_v15 = vmov 1  }
  0x13   :  { %v26_v2 = vadd.f32 %v25_v1, %v24_v0  ;;  %v29_v3 = vmul.f32 %v24_v0, %v24_v0  ;;  %v30_v4 = vmul.f32 %v25_v1, %v25_v1  ;;  %87 = vset.pattern.permute.xlu1 %v140_v6  ;;  %88 = vset.pattern.permute.xlu0 %v141_v15  ;;  %v43_v16 = vld [vmem:[%s187_s1] sm:$0xff]  ;;  %s142_s22 = smov 1   ;;  %s143_s23 = smov [#allocation5]  }
  0x14   :  { %s73_s24 = sshll.u32 %s143_s23, 4  ;;  %s74_s24 = int_to_ptr.vmem [resolvable:$true] %s73_s24 }
  0x15   :  { %27 = vadd.xlane.f32.xlu0 %v26_v2  ;;  %v31_v5 = vadd.f32 %v30_v4, %v29_v3  ;;  %s113_s1 = scalar_lea.vmem %s74_s24, 256  ;;  %p118_p9 = scmp.lt.s32.totalorder %s74_s24, %s74_s24 }
  0x16   :  { %p114_p8 = scmp.ne.s32.totalorder %s74_s24, %s113_s1  ;;  %p119_p10 = scmp.lt.s32.totalorder %s113_s1, %s113_s1 }
  0x18   :  { %p120_p11 = por %p119_p10, %p118_p9 }
  0x19   :  { %32 = vadd.xlane.f32.xlu0 %v31_v5 }
  0x1a   :  { %p121_p12 = pnand %p120_p11, %p114_p8 }
  0xa2   :  { %v28_v7 = vpop.xlane.xlu0 %27 }
  0xa3   :  { %v34_v8 = vmul.f32 0.00390625, %v28_v7 }
  0xa5   :  { %v36_v10 = vmul.f32 %v34_v8, %v34_v8 }
  0xa6   :  { %v33_v9 = vpop.xlane.xlu0 %32 }
  0xa7   :  { %v35_v11 = vmul.f32 0.00390625, %v33_v9 }
  0xa9   :  { %v37_v12 = vsub.f32 %v35_v11, %v36_v10 }
  0xab   :  { %v38_v13 = vmax.f32 %v37_v12, 0.0 }
  0xad   :  { %v39_v14 = vadd.f32 1e-05, %v38_v13 }
  0xaf   :  { %89 = vrsqrt.f32 %v39_v14 }
  0xb9   :  { %v90_v17 = vpop.eup %89 }
  0xba   :  { %v44_v18 = vmul.f32 %v90_v17, %v43_v16 }
  0xbc   :  { %v45_v19 = vmul.f32 %v44_v18, %v34_v8 }
  0xbe   :  { %47 = vrot.lane.b32.xlu1 %v45_v19, %s142_s22 }
  0xc2   :  { %53 = vperm.xlu1 %87, %v44_v18  }
 0x130   :  { %v48_v20 = vpop.permute.xlu1 %47 }
 0x131   :  { %v50_v21 = vsub.f32 %v43_v16, %v48_v20 }
 0x133   :  { %60 = vperm.xlu0 %88, %v50_v21  }
 0x141   :  { %v54_v22 = vpop.permute.xlu1 %53 }
 0x142   :  { %v56_v23 = vmul.f32 %v54_v22, %v24_v0  ;;  %v57_v24 = vmul.f32 %v54_v22, %v25_v1 }
 0x1b2   :  { %v61_v25 = vpop.permute.xlu0 %60 }
 0x1b3   :  { %v63_v26 = vadd.f32 %v61_v25, %v56_v23  ;;  %v64_v27 = vadd.f32 %v61_v25, %v57_v24 }
 0x1b5   :  { %65 = vst [vmem:[#allocation5] sm:$0xff] %v63_v26  ;;  %66 = vst [vmem:[#allocation5 + $0x8] sm:$0xff] %v64_v27 }
 0x1b6   :  { %124 = shalt.err (!%p121_p12)
}
 0x1b7   :  { %s125_s27 = scalar_lea.hbm %s188_s2, 256 }
 0x1b8   :  { %p126_p13 = scmp.ne.s32.totalorder %s188_s2, %s125_s27  ;;  %p129_p0 = scmp.lt.u32.totalorder %s125_s27, %s188_s2 }
 0x1ba   :  { %p131_p1 = pnand %p129_p0, %p126_p13 }
 0x1bc   :  { %134 = shalt.err (!%p131_p1)
}
 0x1bd   :  { %76 = dma.vmem_to_hbm [thread:$0]  %s74_s24, 256, %s188_s2, [#allocation4]  }
 0x1be   :  { %137 = dma.done.wait [#allocation4], 256  }
 0x1bf   :  { %138 = vsyncadd [#allocation4], 4294967040 }
 0x1c0   :  { %80 = vsyncpa [#allocation3], 1 }
 0x1c1   :  { %81 = vsyncpa [#allocation4], 1 }

</bundles_post_ra>
